<compile_context>
chip_gen: v6e
topology: v6e:2x2x1
jax: 0.10.0
libtpu: 0.0.40
codegen_flags: <defaults>
</compile_context>

<pallas_src>
import functools

import jax
import jax.numpy as jnp
from jax.experimental import pallas as pl
from jax.experimental.pallas import tpu as pltpu


def _round_up(x, m):
    return (x + m - 1) // m * m


def _cdiv(a, b):
    return -(-a // b)


def _quantile_loss_kernel(q_ref, preds_ref, tgt_ref, o_ref, acc_ref, *, inv_count):
    i = pl.program_id(0)

    @pl.when(i == 0)
    def _init():
        acc_ref[...] = jnp.zeros_like(acc_ref)

    preds = preds_ref[...]        # (Q, TC)   lane-dense sample axis
    target = tgt_ref[...]         # (1, TC) (sublane broadcast) or (Q, TC)
    q = q_ref[...]                # (Q, 1)    lane broadcast

    errors = target - preds
    acc_ref[...] += jnp.maximum((q - 1.0) * errors, q * errors)

    @pl.when(i == pl.num_programs(0) - 1)
    def _finalize():
        o_ref[...] = jnp.sum(acc_ref[...], keepdims=True) * inv_count


def quantile_loss(preds, target, quantiles):
    preds = preds.astype(jnp.float32)
    target = target.astype(jnp.float32)
    quantiles = jnp.asarray(quantiles, jnp.float32)

    Q = preds.shape[-1]
    assert quantiles.shape == (Q,), "quantiles must have shape (num_quantiles,)"
    n = preds.size // Q            # flattened sample count
    count = preds.size             # elements averaged over (matches torch .mean())

    # target.expand_as(preds): broadcast leading dims here; keep the
    # quantile-axis broadcast inside the kernel when target has a singleton
    # (or missing) quantile dimension.
    if target.ndim < preds.ndim or target.shape[-1] == 1:
        tgt2 = jnp.broadcast_to(target, preds.shape[:-1] + (1,)).reshape(1, n)
        tq = 1
    else:
        tgt2 = jnp.swapaxes(jnp.broadcast_to(target, preds.shape).reshape(n, Q), 0, 1)
        tq = Q

    preds2 = jnp.swapaxes(preds.reshape(n, Q), 0, 1)      # (Q, N) lane-dense

    # Lane-tile: multiple of 128; double-buffered preds + target tiles plus the
    # f32 accumulator kept under ~8 MiB so the default scoped VMEM (16 MiB on
    # v5e, 32 MiB on v6e/v7x) is never exceeded, while each step moves enough
    # bytes to hide the fixed per-grid-step cost.
    bytes_per_lane = 4 * (2 * Q + 2 * tq + Q)
    tc_cap = max(128, min(128 * 1024,
                          (8 * 1024 * 1024 // bytes_per_lane) // 128 * 128))
    n128 = _round_up(n, 128)
    grid = max(1, _cdiv(n128, tc_cap))
    tc = _round_up(_cdiv(n128, grid), 128)
    n_pad = tc * grid

    pad = n_pad - n
    if pad:
        # zero-padded samples contribute exactly 0 to the loss sum
        preds2 = jnp.pad(preds2, ((0, 0), (0, pad)))
        tgt2 = jnp.pad(tgt2, ((0, 0), (0, pad)))

    q_col = quantiles.reshape(Q, 1)

    kernel = functools.partial(_quantile_loss_kernel, inv_count=1.0 / count)

    out = pl.pallas_call(
        kernel,
        out_shape=jax.ShapeDtypeStruct((1, 1), jnp.float32),
        grid=(grid,),
        in_specs=[
            pl.BlockSpec((Q, 1), lambda i: (0, 0)),        # quantiles (tiny, constant)
            pl.BlockSpec((Q, tc), lambda i: (0, i)),       # preds tile (lane-dense)
            pl.BlockSpec((tq, tc), lambda i: (0, i)),      # target tile
        ],
        out_specs=pl.BlockSpec((1, 1), lambda i: (0, 0)),
        scratch_shapes=[pltpu.VMEM((Q, tc), jnp.float32)],
        compiler_params=pltpu.CompilerParams(
            dimension_semantics=("arbitrary",),            # sequential reduction
        ),
        cost_estimate=pl.CostEstimate(
            flops=5 * count,
            transcendentals=0,
            bytes_accessed=preds2.size * 4 + tgt2.size * 4 + quantiles.size * 4 + 4,
        ),
    )(q_col, preds2, tgt2)

    return out[0, 0]


def quantile_loss_ref(preds, target, quantiles):
    """Pure-JAX reference mirroring the PyTorch forward."""
    target = jnp.broadcast_to(target, preds.shape)
    errors = target - preds
    q = quantiles.reshape((1,) * (preds.ndim - 1) + (quantiles.shape[0],))
    loss = jnp.maximum((q - 1.0) * errors, q * errors)
    return jnp.mean(loss)


if __name__ == "__main__":
    quantile_levels = [0.1, 0.5, 0.9]
    batch, seq = 2, 8
    Q = len(quantile_levels)

    key = jax.random.PRNGKey(0)
    kp, kt = jax.random.split(key)
    preds = jax.random.normal(kp, (batch, seq, Q), jnp.float32)
    target = jax.random.normal(kt, (batch, seq, 1), jnp.float32)
    quantiles = jnp.asarray(quantile_levels, jnp.float32)

    loss = jax.jit(quantile_loss)(preds, target, quantiles)
    loss = jax.block_until_ready(loss)

    ref = quantile_loss_ref(preds, target, quantiles)
    assert loss.shape == ()
    assert jnp.allclose(loss, ref, atol=1e-5, rtol=1e-5), (float(loss), float(ref))

    print("KERNEL_OK")
</pallas_src>

<mosaic_0001>
module attributes {stable_mosaic.version = 11 : i64} {
  func.func @_quantile_loss_kernel(%arg0: i32, %arg1: memref<3x1xf32, #tpu.memory_space<vmem>>, %arg2: memref<3x128xf32, #tpu.memory_space<vmem>>, %arg3: memref<1x128xf32, #tpu.memory_space<vmem>>, %arg4: memref<1x1xf32, #tpu.memory_space<vmem>>, %arg5: memref<3x128xf32, #tpu.memory_space<vmem>>) attributes {dimension_semantics = [#tpu.dimension_semantics<arbitrary>], iteration_bounds = array<i64: 1>, scalar_prefetch = 0 : i64, scratch_operands = 1 : i64, tpu.core_type = #tpu.core_type<tc>, window_params = [{pipeline_mode = #tpu.pipeline_mode<synchronous>, transform_indices = @transform_0, window_bounds = array<i64: 3, 1>}, {transform_indices = @transform_1, window_bounds = array<i64: 3, 128>}, {transform_indices = @transform_2, window_bounds = array<i64: 1, 128>}, {pipeline_mode = #tpu.pipeline_mode<synchronous>, transform_indices = @transform_3, window_bounds = array<i64: 1, 1>}]} {
    %c0_i32 = arith.constant 0 : i32
    %0 = arith.cmpi eq, %arg0, %c0_i32 : i32
    %1 = arith.extui %0 : i1 to i32
    %c0_i32_0 = arith.constant 0 : i32
    %2 = arith.cmpi ne, %1, %c0_i32_0 : i32
    scf.if %2 {
      %cst_12 = arith.constant 0.000000e+00 : f32
      %21 = vector.broadcast %cst_12 : f32 to vector<3x128xf32>
      %c0_13 = arith.constant 0 : index
      %c0_14 = arith.constant 0 : index
      %22 = vector.load %arg5[%c0_13, %c0_14] : memref<3x128xf32, #tpu.memory_space<vmem>>, vector<3x128xf32>
      tpu.vector_store %arg5[%c0_13, %c0_14], %21 {strides = array<i32>} : memref<3x128xf32, #tpu.memory_space<vmem>>, vector<3x128xf32>,
    } else {
    }
    %c0 = arith.constant 0 : index
    %c0_1 = arith.constant 0 : index
    %3 = vector.load %arg2[%c0, %c0_1] : memref<3x128xf32, #tpu.memory_space<vmem>>, vector<3x128xf32>
    %c0_2 = arith.constant 0 : index
    %c0_3 = arith.constant 0 : index
    %4 = vector.load %arg3[%c0_2, %c0_3] : memref<1x128xf32, #tpu.memory_space<vmem>>, vector<1x128xf32>
    %c0_4 = arith.constant 0 : index
    %c0_5 = arith.constant 0 : index
    %5 = vector.load %arg1[%c0_4, %c0_5] : memref<3x1xf32, #tpu.memory_space<vmem>>, vector<3x1xf32>
    %6 = vector.broadcast %4 : vector<1x128xf32> to vector<3x128xf32>
    %7 = arith.subf %6, %3 : vector<3x128xf32>
    %c0_6 = arith.constant 0 : index
    %c0_7 = arith.constant 0 : index
    %8 = vector.load %arg5[%c0_6, %c0_7] : memref<3x128xf32, #tpu.memory_space<vmem>>, vector<3x128xf32>
    %cst = arith.constant 1.000000e+00 : f32
    %9 = vector.broadcast %cst : f32 to vector<3x1xf32>
    %10 = arith.subf %5, %9 : vector<3x1xf32>
    %11 = vector.broadcast %10 : vector<3x1xf32> to vector<3x128xf32>
    %12 = arith.mulf %11, %7 : vector<3x128xf32>
    %13 = vector.broadcast %5 : vector<3x1xf32> to vector<3x128xf32>
    %14 = arith.mulf %13, %7 : vector<3x128xf32>
    %15 = arith.maximumf %12, %14 : vector<3x128xf32>
    %16 = arith.addf %8, %15 : vector<3x128xf32>
    %c0_8 = arith.constant 0 : index
    %c0_9 = arith.constant 0 : index
    %17 = vector.load %arg5[%c0_8, %c0_9] : memref<3x128xf32, #tpu.memory_space<vmem>>, vector<3x128xf32>
    tpu.vector_store %arg5[%c0_8, %c0_9], %16 {strides = array<i32>} : memref<3x128xf32, #tpu.memory_space<vmem>>, vector<3x128xf32>,
    %c0_i32_10 = arith.constant 0 : i32
    %18 = arith.cmpi eq, %arg0, %c0_i32_10 : i32
    %19 = arith.extui %18 : i1 to i32
    %c0_i32_11 = arith.constant 0 : i32
    %20 = arith.cmpi ne, %19, %c0_i32_11 : i32
    scf.if %20 {
      %c0_12 = arith.constant 0 : index
      %c0_13 = arith.constant 0 : index
      %21 = vector.load %arg5[%c0_12, %c0_13] : memref<3x128xf32, #tpu.memory_space<vmem>>, vector<3x128xf32>
      %22 = vector.shape_cast %21 : vector<3x128xf32> to vector<1x3x128xf32>
      %cst_14 = arith.constant dense<0.000000e+00> : vector<1xf32>
      %23 = vector.multi_reduction <add>, %22, %cst_14 [1, 2] : vector<1x3x128xf32> to vector<1xf32>
      %24 = vector.shape_cast %23 : vector<1xf32> to vector<1x1x1xf32>
      %25 = vector.extract %24[0, 0, 0] : f32 from vector<1x1x1xf32>
      %26 = vector.broadcast %25 : f32 to vector<1x1xf32>
      %cst_15 = arith.constant 0.020833334 : f32
      %27 = vector.broadcast %cst_15 : f32 to vector<1x1xf32>
      %28 = arith.mulf %26, %27 : vector<1x1xf32>
      %c0_16 = arith.constant 0 : index
      %c0_17 = arith.constant 0 : index
      %29 = vector.load %arg4[%c0_16, %c0_17] : memref<1x1xf32, #tpu.memory_space<vmem>>, vector<1x1xf32>
      tpu.vector_store %arg4[%c0_16, %c0_17], %28 {strides = array<i32>} : memref<1x1xf32, #tpu.memory_space<vmem>>, vector<1x1xf32>,
    } else {
    }
    return
  }
  func.func @transform_0(%arg0: i32) -> (i32, i32) {
    %c0_i32 = arith.constant 0 : i32
    %c0_i32_0 = arith.constant 0 : i32
    %c0_i32_1 = arith.constant 0 : i32
    return %c0_i32, %c0_i32_0 : i32, i32
  }
  func.func @transform_1(%arg0: i32) -> (i32, i32) {
    %c0_i32 = arith.constant 0 : i32
    %c0_i32_0 = arith.constant 0 : i32
    return %c0_i32, %arg0 : i32, i32
  }
  func.func @transform_2(%arg0: i32) -> (i32, i32) {
    %c0_i32 = arith.constant 0 : i32
    %c0_i32_0 = arith.constant 0 : i32
    return %c0_i32, %arg0 : i32, i32
  }
  func.func @transform_3(%arg0: i32) -> (i32, i32) {
    %c0_i32 = arith.constant 0 : i32
    %c0_i32_0 = arith.constant 0 : i32
    %c0_i32_1 = arith.constant 0 : i32
    return %c0_i32, %c0_i32_0 : i32, i32
  }
}

</mosaic_0001>

<bundles_post_ra>
// kernel: quantile_loss.1
= control target key start
LH: loop header
LB: loop body
LE: loop exit
PB: predicated region body
PF: predicated region fallthrough
CT: control target
= control target key end

     0   :  { %v110_v1 = vmov 0   ;;  %v111_v3 = vmov 0.0   ;;  %s145_s0 = inlined_call_operand.vmem [shape: f32[3,1], index: 0, kind: input, shape index: {}]   ;;  %s146_s1 = inlined_call_operand.vmem [shape: f32[3,128], index: 1, kind: input, shape index: {}]   ;;  %s147_s2 = inlined_call_operand.vmem [shape: f32[1,128], index: 2, kind: input, shape index: {}]   ;;  %s148_s3 = inlined_call_operand.hbm [shape: f32[1,1], index: 3, kind: output, shape index: {}]  }
   0x1   :  { %v22_v0 = vld [vmem:[%s145_s0] sm:$0x7]  ;;  %87 = vset.pattern.permute.xlu0 %v110_v1  ;;  %19 = vst [vmem:[#allocation2] sm:$0x7] %v111_v3 }
   0x2   :  { %v81_v2 = vadd.f32 -1.0, %v22_v0 }
   0x3   :  { %8 = vsyncpa [#allocation4], 0  ;;  %v20_v4 = vld [vmem:[%s146_s1] sm:$0x7]  ;;  %vm51_vm0 = vcmask 1042432   ;;  %s112_s0 = smov [#allocation3]  }
   0x4   :  { %34 = vperm.xlu0 %87, %v81_v2   ;;  %v80_v5 = vld [vmem:[%s147_s2] ss:$0 sm:$0xff]  ;;  %s72_s1 = sshll.u32 %s112_s0, 4  ;;  %vm64_vm1 = vcmask 0   ;;  %s73_s1 = int_to_ptr.vmem [resolvable:$true] %s72_s1 }
   0x5   :  { %v29_v7 = vsub.f32 %v80_v5, %v20_v4  ;;  %s88_s18 = scalar_lea.vmem %s73_s1, 16  ;;  %s92_s19 = scalar_lea.vmem %s73_s1, 32 }
   0x6   :  { %p89_p0 = scmp.ne.s32.totalorder %s73_s1, %s88_s18  ;;  %p93_p1 = scmp.lt.s32.totalorder %s73_s1, %s73_s1 }
   0x7   :  { %p94_p2 = scmp.lt.s32.totalorder %s92_s19, %s88_s18 }
   0x8   :  { %40 = vperm.xlu0 %87, %v22_v0   ;;  %v30_v11 = vld [vmem:[#allocation2] sm:$0x7] }
   0x9   :  { %p95_p3 = por %p94_p2, %p93_p1 }
   0xb   :  { %p96_p4 = pnand %p95_p3, %p89_p0 }
  0x7f   :  { %v35_v6 = vpop.permute.xlu0 %34 }
  0x80   :  { %v37_v9 = vmul.f32 %v35_v6, %v29_v7 }
  0x83   :  { %v41_v8 = vpop.permute.xlu0 %40 }
  0x84   :  { %v43_v10 = vmul.f32 %v41_v8, %v29_v7 }
  0x86   :  { %v44_v12 = vmax.f32 %v37_v9, %v43_v10 }
  0x88   :  { %v45_v13 = vadd.f32 %v44_v12, %v30_v11 }
  0x8a   :  { %46 = vst [vmem:[#allocation2] sm:$0x7] %v45_v13 }
  0x91   :  { %v50_v14 = vld [vmem:[#allocation2] sm:$0x7] }
  0x92   :  { %v52_v15 = vsel %vm51_vm0, %v50_v14, 0.0 }
  0x93   :  { %53 = vadd.xlane.f32.xlu1 %v52_v15 }
 0x11c   :  { %v54_v16 = vpop.xlane.xlu1 %53 }
 0x11d   :  { %v55_v17 = vrot.slane %v54_v16, 4 }
 0x11f   :  { %v56_v18 = vadd.f32 %v55_v17, %v54_v16 }
 0x121   :  { %v57_v19 = vrot.slane %v56_v18, 2 }
 0x123   :  { %v58_v20 = vadd.f32 %v57_v19, %v56_v18 }
 0x125   :  { %v59_v21 = vrot.slane %v58_v20, 1 }
 0x127   :  { %v60_v22 = vadd.f32 %v59_v21, %v58_v20 }
 0x129   :  { %82 = vpush %v60_v22 }
 0x15a   :  { %s83_s2 = spop %82 }
 0x15b   :  { %v62_v23 = vstv %s83_s2 }
 0x15c   :  { %v63_v24 = vmul.f32 0.020833334, %v62_v23 }
 0x15e   :  { %65 = vst.msk [vmem:[#allocation3] sm:$0x1] %vm64_vm1, %v63_v24 }
 0x15f   :  { %99 = shalt.err (!%p96_p4)
}
 0x160   :  { %75 = dma.vmem_to_hbm [thread:$0]  %s73_s1, 16, %s148_s3, [#allocation4]  }
 0x161   :  { %108 = dma.done.wait [#allocation4], 16  }
 0x162   :  { %109 = vsyncadd [#allocation4], 4294967280 }
 0x163   :  { %79 = vsyncpa [#allocation4], 1 }

</bundles_post_ra>
